<compile_context>
chip_gen: v7x
topology: tpu7x:2x2x1
jax: 0.10.0
libtpu: 0.0.40
codegen_flags: <defaults>
</compile_context>

<pallas_src>
import functools

import jax
import jax.numpy as jnp
from jax.experimental import pallas as pl
from jax.experimental.pallas import tpu as pltpu

X_DIM = 2
T_DIM = 2
N_T = 4
HIDDEN = 128
NEG_SLOPE = 0.2

IN_DIM = 2 * X_DIM + T_DIM      # 6 : [x_t, emb(t), x_tp1]   (reference layout)
IN_PACKED = 2 * X_DIM + N_T     # 8 : [x_t, x_tp1, onehot(t)] (kernel layout)


def _round_up(x, m):
    return (x + m - 1) // m * m


def _leaky_relu(v):
    return jnp.where(v > 0, v, NEG_SLOPE * v)


def mlp_kernel(h_ref,
               w1_ref, b1_ref,
               w2_ref, b2_ref,
               w3_ref, b3_ref,
               w4_ref, b4_ref,
               o_ref):
    """One batch tile: 3 hidden layers + transposed final layer.

    Matmul operands are bf16 (MXU) with f32 accumulation; bias + LeakyReLU run
    in f32 on the VPU (v5e has no bf16 VPU path).  The final 128->1 layer is
    computed as (1,128) @ (128, tile_b) so the output row is lane-dense.
    """
    h = h_ref[...]                                                      # (tb, 8) bf16
    a = jnp.dot(h, w1_ref[...], preferred_element_type=jnp.float32) + b1_ref[...]
    a = _leaky_relu(a).astype(jnp.bfloat16)
    a = jnp.dot(a, w2_ref[...], preferred_element_type=jnp.float32) + b2_ref[...]
    a = _leaky_relu(a).astype(jnp.bfloat16)
    a = jnp.dot(a, w3_ref[...], preferred_element_type=jnp.float32) + b3_ref[...]
    a = _leaky_relu(a)                                                  # (tb, 128) f32
    # XLU transpose (idle slot here), then a small M=1 matmul -> compact output row.
    a_t = a.T.astype(jnp.bfloat16)                                      # (128, tb)
    out = jnp.dot(w4_ref[...], a_t, preferred_element_type=jnp.float32)  # (1, tb)
    o_ref[...] = out + b4_ref[0, 0]


def init_params(key):
    """Deterministic parameter init (shapes match the PyTorch module)."""
    ks = jax.random.split(key, 9)
    params = {"emb": jax.random.normal(ks[0], (N_T, T_DIM), jnp.float32)}
    dims = [IN_DIM, HIDDEN, HIDDEN, HIDDEN, 1]
    for li in range(4):
        fan_in, fan_out = dims[li], dims[li + 1]
        bound = 1.0 / (fan_in ** 0.5)
        params[f"w{li + 1}"] = jax.random.uniform(
            ks[1 + 2 * li], (fan_in, fan_out), jnp.float32, -bound, bound)
        params[f"b{li + 1}"] = jax.random.uniform(
            ks[2 + 2 * li], (1, fan_out), jnp.float32, -bound, bound)
    return params


def prepare_params(params):
    """One-time weight packing (hoisted out of the per-call forward).

    With kernel input [x_t, x_tp1, onehot(t)] (width 8), packing
    W1_packed = [W1_x ; W1_xp ; emb_table @ W1_t] reproduces
    concat([x_t, emb(t), x_tp1]) @ W1 exactly (up to the bf16 cast).
    """
    w1 = params["w1"]                                   # (6, 128)
    w1_x = w1[:X_DIM]
    w1_t = w1[X_DIM:X_DIM + T_DIM]
    w1_xp = w1[X_DIM + T_DIM:]
    w1_packed = jnp.concatenate([w1_x, w1_xp, params["emb"] @ w1_t], axis=0)  # (8,128)
    return {
        "w1": w1_packed.astype(jnp.bfloat16),
        "b1": params["b1"],                              # f32 bias path
        "w2": params["w2"].astype(jnp.bfloat16),
        "b2": params["b2"],
        "w3": params["w3"].astype(jnp.bfloat16),
        "b3": params["b3"],
        "w4": params["w4"].T.astype(jnp.bfloat16),       # (1, 128): final layer row
        "b4": params["b4"].reshape(1, 1),                # scalar -> SMEM
    }


def _choose_tiling(b, target_tile):
    """Return (padded_batch, tile_b).

    tile_b is a multiple of 128 so the transposed (1, tile_b) output block is
    lane-dense/unmasked, and there are >= 2 grid steps whenever B > 128 so the
    'parallel' batch axis shards across v7x's two TensorCores.
    """
    b128 = _round_up(b, 128)
    if b128 <= 128:
        return b128, b128                               # single small tile
    n_tiles = max(pl.cdiv(b128, target_tile), 2)
    tile_b = _round_up(pl.cdiv(b128, n_tiles), 128)
    return n_tiles * tile_b, tile_b


@functools.partial(jax.jit, static_argnames=("target_tile",))
def discriminator_forward(packed, x_t, t, x_tp1, target_tile=2048):
    b = x_t.shape[0]
    b_pad, tile_b = _choose_tiling(b, target_tile)
    grid = (b_pad // tile_b,)

    # Glue (plain JAX, fuses into one small op): packed input, no gather needed.
    onehot = (t[:, None] == jnp.arange(N_T, dtype=t.dtype)[None, :])
    h = jnp.concatenate([x_t, x_tp1, onehot.astype(x_t.dtype)], axis=1)   # (B, 8)
    h = jnp.pad(h, ((0, b_pad - b), (0, 0))).astype(jnp.bfloat16)         # (b_pad, 8)

    full = lambda shape: pl.BlockSpec(shape, lambda i: (0, 0))

    flops = 2 * b_pad * (IN_PACKED * HIDDEN + 2 * HIDDEN * HIDDEN + HIDDEN)
    bytes_accessed = (h.size * 2 + 4 * b_pad
                      + 2 * (IN_PACKED * HIDDEN + 2 * HIDDEN * HIDDEN + HIDDEN)
                      + 4 * (3 * HIDDEN + 1))
    cost = pl.CostEstimate(flops=flops, transcendentals=0,
                           bytes_accessed=bytes_accessed)

    out = pl.pallas_call(
        mlp_kernel,
        out_shape=jax.ShapeDtypeStruct((1, b_pad), jnp.float32),
        grid_spec=pltpu.PrefetchScalarGridSpec(
            num_scalar_prefetch=0,
            grid=grid,
            in_specs=[
                pl.BlockSpec((tile_b, IN_PACKED), lambda i: (i, 0)),     # h tile
                full((IN_PACKED, HIDDEN)), full((1, HIDDEN)),            # layer 1
                full((HIDDEN, HIDDEN)), full((1, HIDDEN)),               # layer 2
                full((HIDDEN, HIDDEN)), full((1, HIDDEN)),               # layer 3
                full((1, HIDDEN)),                                       # w4 row
                pl.BlockSpec(memory_space=pltpu.MemorySpace.SMEM),       # b4 scalar
            ],
            out_specs=pl.BlockSpec((1, tile_b), lambda i: (0, i)),
        ),
        compiler_params=pltpu.CompilerParams(
            dimension_semantics=("parallel",)),
        cost_estimate=cost,
    )(h, packed["w1"], packed["b1"], packed["w2"], packed["b2"],
      packed["w3"], packed["b3"], packed["w4"], packed["b4"])

    # Lane-dense (1, b_pad) row -> logical (B,) (matches torch .squeeze()).
    return jnp.squeeze(out[:, :b])


def discriminator_forward_ref(params, x_t, t, x_tp1):
    """Pure-JAX f32 reference for correctness checking."""
    emb = jnp.take(params["emb"], t, axis=0)
    h = jnp.concatenate([x_t, emb, x_tp1], axis=1)
    for li in range(1, 4):
        h = _leaky_relu(h @ params[f"w{li}"] + params[f"b{li}"])
    return jnp.squeeze(h @ params["w4"] + params["b4"])


if __name__ == "__main__":
    key = jax.random.PRNGKey(0)
    k_params, kx, kt, kxp = jax.random.split(key, 4)

    params = init_params(k_params)
    packed = prepare_params(params)          # one-time weight packing (hoisted)

    B = 64
    x_t = jax.random.normal(kx, (B, X_DIM), jnp.float32)
    t = jax.random.randint(kt, (B,), 0, N_T, jnp.int32)
    x_tp1 = jax.random.normal(kxp, (B, X_DIM), jnp.float32)

    out = jax.block_until_ready(discriminator_forward(packed, x_t, t, x_tp1))

    ref = discriminator_forward_ref(params, x_t, t, x_tp1)
    assert out.shape == (B,), out.shape
    # bf16 matmul operands (f32 accumulation) -> loosened tolerance vs f32 ref.
    err = float(jnp.max(jnp.abs(out - ref)))
    assert jnp.allclose(out, ref, atol=5e-2, rtol=5e-2), f"max abs err {err}"

    print("KERNEL_OK")
</pallas_src>

<mosaic_0001>
module attributes {stable_mosaic.version = 11 : i64} {
  func.func @mlp_kernel(%arg0: i32, %arg1: memref<128x8xbf16, #tpu.memory_space<vmem>>, %arg2: memref<8x128xbf16, #tpu.memory_space<vmem>>, %arg3: memref<1x128xf32, #tpu.memory_space<vmem>>, %arg4: memref<128x128xbf16, #tpu.memory_space<vmem>>, %arg5: memref<1x128xf32, #tpu.memory_space<vmem>>, %arg6: memref<128x128xbf16, #tpu.memory_space<vmem>>, %arg7: memref<1x128xf32, #tpu.memory_space<vmem>>, %arg8: memref<1x128xbf16, #tpu.memory_space<vmem>>, %arg9: memref<1x1xf32, #tpu.memory_space<smem>>, %arg10: memref<1x128xf32, #tpu.memory_space<vmem>>) attributes {dimension_semantics = [#tpu.dimension_semantics<parallel>], iteration_bounds = array<i64: 1>, scalar_prefetch = 0 : i64, scratch_operands = 0 : i64, tpu.core_type = #tpu.core_type<tc>, window_params = [{transform_indices = @transform_0, window_bounds = array<i64: 128, 8>}, {pipeline_mode = #tpu.pipeline_mode<synchronous>, transform_indices = @transform_1, window_bounds = array<i64: 8, 128>}, {pipeline_mode = #tpu.pipeline_mode<synchronous>, transform_indices = @transform_2, window_bounds = array<i64: 1, 128>}, {pipeline_mode = #tpu.pipeline_mode<synchronous>, transform_indices = @transform_3, window_bounds = array<i64: 128, 128>}, {pipeline_mode = #tpu.pipeline_mode<synchronous>, transform_indices = @transform_4, window_bounds = array<i64: 1, 128>}, {pipeline_mode = #tpu.pipeline_mode<synchronous>, transform_indices = @transform_5, window_bounds = array<i64: 128, 128>}, {pipeline_mode = #tpu.pipeline_mode<synchronous>, transform_indices = @transform_6, window_bounds = array<i64: 1, 128>}, {pipeline_mode = #tpu.pipeline_mode<synchronous>, transform_indices = @transform_7, window_bounds = array<i64: 1, 128>}, {transform_indices = @transform_8, window_bounds = array<i64: 1, 1>}, {transform_indices = @transform_9, window_bounds = array<i64: 1, 128>}]} {
    %c0 = arith.constant 0 : index
    %c0_0 = arith.constant 0 : index
    %0 = vector.load %arg1[%c0, %c0_0] : memref<128x8xbf16, #tpu.memory_space<vmem>>, vector<128x8xbf16>
    %c0_1 = arith.constant 0 : index
    %c0_2 = arith.constant 0 : index
    %1 = vector.load %arg2[%c0_1, %c0_2] : memref<8x128xbf16, #tpu.memory_space<vmem>>, vector<8x128xbf16>
    %cst = arith.constant dense<0.000000e+00> : vector<128x128xf32>
    %2 = tpu.matmul %0, %1, %cst {dimension_numbers = #tpu.dot_dimension_numbers<[1], [0], [0], [1], [0, 0, 1, 1], [], []>} : vector<128x8xbf16>, vector<8x128xbf16>, vector<128x128xf32> -> vector<128x128xf32>
    %c0_3 = arith.constant 0 : index
    %c0_4 = arith.constant 0 : index
    %3 = vector.load %arg3[%c0_3, %c0_4] : memref<1x128xf32, #tpu.memory_space<vmem>>, vector<1x128xf32>
    %4 = vector.broadcast %3 : vector<1x128xf32> to vector<128x128xf32>
    %5 = arith.addf %2, %4 : vector<128x128xf32>
    %cst_5 = arith.constant 0.000000e+00 : f32
    %6 = vector.broadcast %cst_5 : f32 to vector<128x128xf32>
    %7 = arith.cmpf ogt, %5, %6 : vector<128x128xf32>
    %cst_6 = arith.constant 2.000000e-01 : f32
    %8 = vector.broadcast %cst_6 : f32 to vector<128x128xf32>
    %9 = arith.mulf %8, %5 : vector<128x128xf32>
    %10 = arith.select %7, %5, %9 : vector<128x128xi1>, vector<128x128xf32>
    %11 = arith.truncf %10 : vector<128x128xf32> to vector<128x128xbf16>
    %c0_7 = arith.constant 0 : index
    %c0_8 = arith.constant 0 : index
    %12 = vector.load %arg4[%c0_7, %c0_8] : memref<128x128xbf16, #tpu.memory_space<vmem>>, vector<128x128xbf16>
    %cst_9 = arith.constant dense<0.000000e+00> : vector<128x128xf32>
    %13 = tpu.matmul %11, %12, %cst_9 {dimension_numbers = #tpu.dot_dimension_numbers<[1], [0], [0], [1], [0, 0, 1, 1], [], []>} : vector<128x128xbf16>, vector<128x128xbf16>, vector<128x128xf32> -> vector<128x128xf32>
    %c0_10 = arith.constant 0 : index
    %c0_11 = arith.constant 0 : index
    %14 = vector.load %arg5[%c0_10, %c0_11] : memref<1x128xf32, #tpu.memory_space<vmem>>, vector<1x128xf32>
    %15 = vector.broadcast %14 : vector<1x128xf32> to vector<128x128xf32>
    %16 = arith.addf %13, %15 : vector<128x128xf32>
    %cst_12 = arith.constant 0.000000e+00 : f32
    %17 = vector.broadcast %cst_12 : f32 to vector<128x128xf32>
    %18 = arith.cmpf ogt, %16, %17 : vector<128x128xf32>
    %cst_13 = arith.constant 2.000000e-01 : f32
    %19 = vector.broadcast %cst_13 : f32 to vector<128x128xf32>
    %20 = arith.mulf %19, %16 : vector<128x128xf32>
    %21 = arith.select %18, %16, %20 : vector<128x128xi1>, vector<128x128xf32>
    %22 = arith.truncf %21 : vector<128x128xf32> to vector<128x128xbf16>
    %c0_14 = arith.constant 0 : index
    %c0_15 = arith.constant 0 : index
    %23 = vector.load %arg6[%c0_14, %c0_15] : memref<128x128xbf16, #tpu.memory_space<vmem>>, vector<128x128xbf16>
    %cst_16 = arith.constant dense<0.000000e+00> : vector<128x128xf32>
    %24 = tpu.matmul %22, %23, %cst_16 {dimension_numbers = #tpu.dot_dimension_numbers<[1], [0], [0], [1], [0, 0, 1, 1], [], []>} : vector<128x128xbf16>, vector<128x128xbf16>, vector<128x128xf32> -> vector<128x128xf32>
    %c0_17 = arith.constant 0 : index
    %c0_18 = arith.constant 0 : index
    %25 = vector.load %arg7[%c0_17, %c0_18] : memref<1x128xf32, #tpu.memory_space<vmem>>, vector<1x128xf32>
    %26 = vector.broadcast %25 : vector<1x128xf32> to vector<128x128xf32>
    %27 = arith.addf %24, %26 : vector<128x128xf32>
    %cst_19 = arith.constant 0.000000e+00 : f32
    %28 = vector.broadcast %cst_19 : f32 to vector<128x128xf32>
    %29 = arith.cmpf ogt, %27, %28 : vector<128x128xf32>
    %cst_20 = arith.constant 2.000000e-01 : f32
    %30 = vector.broadcast %cst_20 : f32 to vector<128x128xf32>
    %31 = arith.mulf %30, %27 : vector<128x128xf32>
    %32 = arith.select %29, %27, %31 : vector<128x128xi1>, vector<128x128xf32>
    %33 = tpu.transpose %32, [1, 0] : vector<128x128xf32> -> vector<128x128xf32>
    %34 = arith.truncf %33 : vector<128x128xf32> to vector<128x128xbf16>
    %c0_21 = arith.constant 0 : index
    %c0_22 = arith.constant 0 : index
    %35 = vector.load %arg8[%c0_21, %c0_22] : memref<1x128xbf16, #tpu.memory_space<vmem>>, vector<1x128xbf16>
    %cst_23 = arith.constant dense<0.000000e+00> : vector<1x128xf32>
    %36 = tpu.matmul %35, %34, %cst_23 {dimension_numbers = #tpu.dot_dimension_numbers<[1], [0], [0], [1], [0, 0, 1, 1], [], []>} : vector<1x128xbf16>, vector<128x128xbf16>, vector<1x128xf32> -> vector<1x128xf32>
    %c0_24 = arith.constant 0 : index
    %c0_25 = arith.constant 0 : index
    %37 = memref.load %arg9[%c0_24, %c0_25] : memref<1x1xf32, #tpu.memory_space<smem>>
    %38 = vector.broadcast %37 : f32 to vector<1x128xf32>
    %39 = arith.addf %36, %38 : vector<1x128xf32>
    %c0_26 = arith.constant 0 : index
    %c0_27 = arith.constant 0 : index
    %40 = vector.load %arg10[%c0_26, %c0_27] : memref<1x128xf32, #tpu.memory_space<vmem>>, vector<1x128xf32>
    tpu.vector_store %arg10[%c0_26, %c0_27], %39 {strides = array<i32>} : memref<1x128xf32, #tpu.memory_space<vmem>>, vector<1x128xf32>,
    return
  }
  func.func @transform_0(%arg0: i32) -> (i32, i32) {
    %c0_i32 = arith.constant 0 : i32
    %c0_i32_0 = arith.constant 0 : i32
    return %arg0, %c0_i32 : i32, i32
  }
  func.func @transform_1(%arg0: i32) -> (i32, i32) {
    %c0_i32 = arith.constant 0 : i32
    %c0_i32_0 = arith.constant 0 : i32
    %c0_i32_1 = arith.constant 0 : i32
    return %c0_i32, %c0_i32_0 : i32, i32
  }
  func.func @transform_2(%arg0: i32) -> (i32, i32) {
    %c0_i32 = arith.constant 0 : i32
    %c0_i32_0 = arith.constant 0 : i32
    %c0_i32_1 = arith.constant 0 : i32
    return %c0_i32, %c0_i32_0 : i32, i32
  }
  func.func @transform_3(%arg0: i32) -> (i32, i32) {
    %c0_i32 = arith.constant 0 : i32
    %c0_i32_0 = arith.constant 0 : i32
    %c0_i32_1 = arith.constant 0 : i32
    return %c0_i32, %c0_i32_0 : i32, i32
  }
  func.func @transform_4(%arg0: i32) -> (i32, i32) {
    %c0_i32 = arith.constant 0 : i32
    %c0_i32_0 = arith.constant 0 : i32
    %c0_i32_1 = arith.constant 0 : i32
    return %c0_i32, %c0_i32_0 : i32, i32
  }
  func.func @transform_5(%arg0: i32) -> (i32, i32) {
    %c0_i32 = arith.constant 0 : i32
    %c0_i32_0 = arith.constant 0 : i32
    %c0_i32_1 = arith.constant 0 : i32
    return %c0_i32, %c0_i32_0 : i32, i32
  }
  func.func @transform_6(%arg0: i32) -> (i32, i32) {
    %c0_i32 = arith.constant 0 : i32
    %c0_i32_0 = arith.constant 0 : i32
    %c0_i32_1 = arith.constant 0 : i32
    return %c0_i32, %c0_i32_0 : i32, i32
  }
  func.func @transform_7(%arg0: i32) -> (i32, i32) {
    %c0_i32 = arith.constant 0 : i32
    %c0_i32_0 = arith.constant 0 : i32
    %c0_i32_1 = arith.constant 0 : i32
    return %c0_i32, %c0_i32_0 : i32, i32
  }
  func.func @transform_8(%arg0: i32) -> (i32, i32) {
    %c0_i32 = arith.constant 0 : i32
    %c0_i32_0 = arith.constant 0 : i32
    %c0_i32_1 = arith.constant 0 : i32
    return %c0_i32, %c0_i32_0 : i32, i32
  }
  func.func @transform_9(%arg0: i32) -> (i32, i32) {
    %c0_i32 = arith.constant 0 : i32
    %c0_i32_0 = arith.constant 0 : i32
    return %c0_i32, %arg0 : i32, i32
  }
}

</mosaic_0001>

<bundles_post_ra>
// kernel: discriminator_forward.1
= control target key start
LH: loop header
LB: loop body
LE: loop exit
PB: predicated region body
PF: predicated region fallthrough
CT: control target
= control target key end

     0   :  { %vm123_vm0 = vcmask 1043456   ;;  %vm98_vm1 = vcmask 64512   ;;  %s1238_s1 = inlined_call_operand.vmem [shape: bf16[8,128], index: 1, kind: input, shape index: {}]   ;;  %s1239_s0 = inlined_call_operand.vmem [shape: bf16[128,8], index: 0, kind: input, shape index: {}]   ;;  %s1240_s3 = inlined_call_operand.vmem [shape: bf16[128,128], index: 3, kind: input, shape index: {}]   ;;  %s1241_s5 = inlined_call_operand.vmem [shape: bf16[128,128], index: 5, kind: input, shape index: {}]   ;;  %s1242_s2 = inlined_call_operand.vmem [shape: f32[1,128], index: 2, kind: input, shape index: {}]   ;;  %s1243_s4 = inlined_call_operand.vmem [shape: f32[1,128], index: 4, kind: input, shape index: {}]   ;;  %s1244_s6 = inlined_call_operand.vmem [shape: f32[1,128], index: 6, kind: input, shape index: {}]   ;;  %s1245_s7 = inlined_call_operand.vmem [shape: bf16[1,128], index: 7, kind: input, shape index: {}]   ;;  %s1246_s8 = inlined_call_operand.<no memory space> [shape: f32[1,1], index: 8, kind: input, shape index: {}]   ;;  %s1247_s9 = inlined_call_operand.vmem [shape: f32[1,128], index: 9, kind: output, shape index: {}]  }
   0x1   :  { %v50_v0 = vld [vmem:[%s1238_s1] sm:$0xf]  ;;  %v999_v3 = vld [vmem:[%s1239_s0 + $0x8] sm:$0xff]   ;;  %v1000_v4 = vld [vmem:[%s1239_s0 + $0x10] sm:$0xff]  }
   0x2   :  { %995 = vmatprep.subr.msk.bf16.mxu0 %vm123_vm0, %v50_v0  ;;  %v125_v1 = vsel %vm123_vm0, %v50_v0, 0  ;;  %v998_v2 = vld [vmem:[%s1239_s0] sm:$0xff]   ;;  %v1001_v5 = vld [vmem:[%s1239_s0 + $0x18] sm:$0xff]   ;;  %v1007_v8 = vld [vmem:[%s1240_s3 + $0x8] sm:$0xff]  }
   0x3   :  { %894 = vmatpush3.bf16.msra.mxu0 %v125_v1  ;;  %895 = vmatprep.mubr.msk.bf16.mxu0 %vm98_vm1, %v998_v2  ;;  %v1002_v6 = vld [vmem:[%s1239_s0 + $0x20] sm:$0xff]   ;;  %v1008_v9 = vld [vmem:[%s1240_s3 + $0x10] sm:$0xff]   ;;  %v1003_v10 = vld [vmem:[%s1239_s0 + $0x28] sm:$0xff]  }
   0x4   :  { %v1006_v7 = vld [vmem:[%s1240_s3] sm:$0xff]   ;;  %v1009_v11 = vld [vmem:[%s1240_s3 + $0x18] sm:$0xff]   ;;  %v1004_v12 = vld [vmem:[%s1239_s0 + $0x30] sm:$0xff]  }
   0x5   :  { %911 = vmatprep.subr.bf16.mxu1 %v1006_v7  ;;  %v1010_v13 = vld [vmem:[%s1240_s3 + $0x20] sm:$0xff]   ;;  %v1005_v14 = vld [vmem:[%s1239_s0 + $0x38] sm:$0xff]   ;;  %v1011_v15 = vld [vmem:[%s1240_s3 + $0x28] sm:$0xff]  }
   0x6   :  { %896 = vmatmul.mubr.msk.bf16.vlgmr.msra.gmra.mrb[0].mxu0 %vm98_vm1, %v999_v3  ;;  %912 = vmatpush3.bf16.msra.mxu1 %v1006_v7  ;;  %v1012_v16 = vld [vmem:[%s1240_s3 + $0x30] sm:$0xff]   ;;  %v1013_v17 = vld [vmem:[%s1240_s3 + $0x38] sm:$0xff]   ;;  %v1014_v18 = vld [vmem:[%s1241_s5] sm:$0xff]  }
   0x7   :  { %899 = vmatprep.mubr.msk.bf16.mxu0 %vm98_vm1, %v1000_v4  ;;  %913 = vmatprep.subr.bf16.mxu1 %v1007_v8  ;;  %v1015_v19 = vld [vmem:[%s1241_s5 + $0x8] sm:$0xff]   ;;  %v1016_v20 = vld [vmem:[%s1241_s5 + $0x10] sm:$0xff]   ;;  %v1017_v21 = vld [vmem:[%s1241_s5 + $0x18] sm:$0xff]  }
   0x8   :  { %943 = vmatprep.subr.bf16.mxu0 %v1014_v18  ;;  %v1018_v22 = vld [vmem:[%s1241_s5 + $0x20] sm:$0xff]  }
   0x9   :  { %944 = vmatpush3.bf16.msra.mxu0 %v1014_v18  ;;  %v1151_v23 = vld [vmem:[%s1242_s2] ss:$0 sm:$0xff] }
   0xa   :  { %914 = vmatpush3.bf16.msra.mxu1 %v1007_v8  ;;  %945 = vmatprep.subr.bf16.mxu0 %v1015_v19 }
   0xb   :  { %915 = vmatprep.subr.bf16.mxu1 %v1008_v9 }
   0xd   :  { %946 = vmatpush3.bf16.msra.mxu0 %v1015_v19 }
   0xe   :  { %900 = vmatmul.mubr.msk.bf16.gmra.mrb[4].mxu0 %vm98_vm1, %v1001_v5  ;;  %916 = vmatpush3.bf16.msra.mxu1 %v1008_v9 }
   0xf   :  { %903 = vmatprep.mubr.msk.bf16.mxu0 %vm98_vm1, %v1002_v6  ;;  %917 = vmatprep.subr.bf16.mxu1 %v1009_v11 }
  0x10   :  { %947 = vmatprep.subr.bf16.mxu0 %v1016_v20 }
  0x11   :  { %948 = vmatpush3.bf16.msra.mxu0 %v1016_v20 }
  0x12   :  { %918 = vmatpush3.bf16.msra.mxu1 %v1009_v11  ;;  %949 = vmatprep.subr.bf16.mxu0 %v1017_v21 }
  0x13   :  { %919 = vmatprep.subr.bf16.mxu1 %v1010_v13 }
  0x15   :  { %950 = vmatpush3.bf16.msra.mxu0 %v1017_v21 }
  0x16   :  { %904 = vmatmul.mubr.msk.bf16.gmra.mrb[8].mxu0 %vm98_vm1, %v1003_v10  ;;  %920 = vmatpush3.bf16.msra.mxu1 %v1010_v13 }
  0x17   :  { %907 = vmatprep.mubr.msk.bf16.mxu0 %vm98_vm1, %v1004_v12  ;;  %921 = vmatprep.subr.bf16.mxu1 %v1011_v15 }
  0x18   :  { %951 = vmatprep.subr.bf16.mxu0 %v1018_v22 }
  0x19   :  { %952 = vmatpush3.bf16.msra.mxu0 %v1018_v22 }
  0x1a   :  { %922 = vmatpush3.bf16.msra.mxu1 %v1011_v15 }
  0x1b   :  { %923 = vmatprep.subr.bf16.mxu1 %v1012_v16 }
  0x1e   :  { %908 = vmatmul.mubr.msk.bf16.gmra.mrb[12].mxu0 %vm98_vm1, %v1005_v14  ;;  %924 = vmatpush3.bf16.msra.mxu1 %v1012_v16 }
  0x1f   :  { %925 = vmatprep.subr.bf16.mxu1 %v1013_v17 }
  0x22   :  { %926 = vmatpush3.bf16.msra.mxu1 %v1013_v17 }
  0xd9   :  { %v897_v24 = vpop.f32.mrb[0].mxu0 }
  0xda   :  { %v170_v25 = vadd.f32 %v897_v24, %v1151_v23  ;;  %v161_v26 = vpop.f32.mrb[1].mxu0 }
  0xdb   :  { %v162_v27 = vadd.f32 %v1151_v23, %v161_v26  ;;  %v898_v28 = vpop.f32.mrb[2].mxu0 }
  0xdc   :  { %v242_v29 = vmul.f32 0.2, %v170_v25  ;;  %v173_v30 = vadd.f32 %v898_v28, %v1151_v23  ;;  %v164_v31 = vpop.f32.mrb[3].mxu0  ;;  %vm226_vm2 = vcmp.gt.f32.partialorder %v170_v25, 0.0 }
  0xdd   :  { %v240_v32 = vmul.f32 0.2, %v162_v27  ;;  %v165_v33 = vadd.f32 %v1151_v23, %v164_v31  ;;  %vm224_vm4 = vcmp.gt.f32.partialorder %v162_v27, 0.0 }
  0xde   :  { %vm227_vm3 = vcmp.gt.f32.partialorder %v173_v30, 0.0  ;;  %v243_v34 = vmul.f32 0.2, %v173_v30  ;;  %v258_v36 = vsel %vm226_vm2, %v170_v25, %v242_v29 }
  0xdf   :  { %v241_v35 = vmul.f32 0.2, %v165_v33  ;;  %vm225_vm5 = vcmp.gt.f32.partialorder %v165_v33, 0.0  ;;  %v256_v39 = vsel %vm224_vm4, %v162_v27, %v240_v32 }
  0xe0   :  { %v259_v37 = vsel %vm227_vm3, %v173_v30, %v243_v34  ;;  %v1021_v34 = vld [vmem:[%s1241_s5 + $0x38] sm:$0xff]  }
  0xe1   :  { %v901_v38 = vpop.f32.mrb[4].mxu0  ;;  %v257_v40 = vsel %vm225_vm5, %v165_v33, %v241_v35  ;;  %v273_v41 = vpack.c.bf16 %v259_v37, %v258_v36  ;;  %v1019_v33 = vld [vmem:[%s1241_s5 + $0x28] sm:$0xff]   ;;  %v1181_v35 = vld [vmem:[%s1243_s4] ss:$0 sm:$0xff] }
  0xe2   :  { %v186_v42 = vadd.f32 %v901_v38, %v1151_v23  ;;  %v177_v43 = vpop.f32.mrb[5].mxu0  ;;  %v272_v44 = vpack.c.bf16 %v257_v40, %v256_v39  ;;  %953 = vmatprep.subr.bf16.mxu0 %v1019_v33 }
  0xe3   :  { %v178_v45 = vadd.f32 %v1151_v23, %v177_v43  ;;  %v902_v46 = vpop.f32.mrb[6].mxu0  ;;  %954 = vmatpush3.bf16.msra.mxu0 %v1019_v33 }
  0xe4   :  { %vm230_vm6 = vcmp.gt.f32.partialorder %v186_v42, 0.0  ;;  %v246_v47 = vmul.f32 0.2, %v186_v42  ;;  %v189_v48 = vadd.f32 %v902_v46, %v1151_v23  ;;  %v180_v49 = vpop.f32.mrb[7].mxu0  ;;  %927 = vmatprep.mubr.bf16.mxu1 %v272_v44 }
  0xe5   :  { %vm228_vm7 = vcmp.gt.f32.partialorder %v178_v45, 0.0  ;;  %v244_v50 = vmul.f32 0.2, %v178_v45  ;;  %v181_v51 = vadd.f32 %v1151_v23, %v180_v49  ;;  %928 = vmatmul.mubr.bf16.vlgmr.msra.gmra.mrb[0].mxu1 %v273_v41 }
  0xe6   :  { %vm231_vm8 = vcmp.gt.f32.partialorder %v189_v48, 0.0  ;;  %v247_v52 = vmul.f32 0.2, %v189_v48  ;;  %v262_v53 = vsel %vm230_vm6, %v186_v42, %v246_v47 }
  0xe7   :  { %vm229_vm9 = vcmp.gt.f32.partialorder %v181_v51, 0.0  ;;  %v245_v54 = vmul.f32 0.2, %v181_v51  ;;  %v260_v55 = vsel %vm228_vm7, %v178_v45, %v244_v50 }
  0xe8   :  { %v263_v56 = vsel %vm231_vm8, %v189_v48, %v247_v52 }
  0xe9   :  { %v905_v57 = vpop.f32.mrb[8].mxu0  ;;  %v261_v58 = vsel %vm229_vm9, %v181_v51, %v245_v54  ;;  %v275_v59 = vpack.c.bf16 %v263_v56, %v262_v53 }
  0xea   :  { %v202_v60 = vadd.f32 %v905_v57, %v1151_v23  ;;  %v193_v61 = vpop.f32.mrb[9].mxu0  ;;  %v274_v62 = vpack.c.bf16 %v261_v58, %v260_v55 }
  0xeb   :  { %v194_v63 = vadd.f32 %v1151_v23, %v193_v61  ;;  %v906_v0 = vpop.f32.mrb[10].mxu0 }
  0xec   :  { %vm234_vm10 = vcmp.gt.f32.partialorder %v202_v60, 0.0  ;;  %v250_v1 = vmul.f32 0.2, %v202_v60  ;;  %v205_v2 = vadd.f32 %v906_v0, %v1151_v23  ;;  %v196_v3 = vpop.f32.mrb[11].mxu0  ;;  %931 = vmatprep.mubr.bf16.mxu1 %v274_v62 }
  0xed   :  { %vm232_vm11 = vcmp.gt.f32.partialorder %v194_v63, 0.0  ;;  %v248_v4 = vmul.f32 0.2, %v194_v63  ;;  %v197_v5 = vadd.f32 %v1151_v23, %v196_v3  ;;  %932 = vmatmul.mubr.bf16.gmra.mrb[4].mxu1 %v275_v59 }
  0xee   :  { %vm235_vm12 = vcmp.gt.f32.partialorder %v205_v2, 0.0  ;;  %v251_v6 = vmul.f32 0.2, %v205_v2  ;;  %v266_v7 = vsel %vm234_vm10, %v202_v60, %v250_v1 }
  0xef   :  { %vm233_vm13 = vcmp.gt.f32.partialorder %v197_v5, 0.0  ;;  %v249_v8 = vmul.f32 0.2, %v197_v5  ;;  %v264_v9 = vsel %vm232_vm11, %v194_v63, %v248_v4 }
  0xf0   :  { %v267_v10 = vsel %vm235_vm12, %v205_v2, %v251_v6 }
  0xf1   :  { %v265_v11 = vsel %vm233_vm13, %v197_v5, %v249_v8  ;;  %v277_v12 = vpack.c.bf16 %v267_v10, %v266_v7  ;;  %v909_v13 = vpop.f32.mrb[12].mxu0 }
  0xf2   :  { %v276_v14 = vpack.c.bf16 %v265_v11, %v264_v9  ;;  %v218_v15 = vadd.f32 %v909_v13, %v1151_v23  ;;  %v209_v16 = vpop.f32.mrb[13].mxu0 }
  0xf3   :  { %v210_v17 = vadd.f32 %v1151_v23, %v209_v16  ;;  %v910_v18 = vpop.f32.mrb[14].mxu0 }
  0xf4   :  { %935 = vmatprep.mubr.bf16.mxu1 %v276_v14  ;;  %vm238_vm14 = vcmp.gt.f32.partialorder %v218_v15, 0.0  ;;  %v254_v19 = vmul.f32 0.2, %v218_v15  ;;  %v221_v20 = vadd.f32 %v910_v18, %v1151_v23  ;;  %v212_v21 = vpop.f32.mrb[15].mxu0 }
  0xf5   :  { %936 = vmatmul.mubr.bf16.gmra.mrb[8].mxu1 %v277_v12  ;;  %vm236_vm15 = vcmp.gt.f32.partialorder %v210_v17, 0.0  ;;  %v252_v22 = vmul.f32 0.2, %v210_v17  ;;  %v213_v24 = vadd.f32 %v1151_v23, %v212_v21  ;;  %v1020_v23 = vld [vmem:[%s1241_s5 + $0x30] sm:$0xff]  }
  0xf6   :  { %vm239_vm0 = vcmp.gt.f32.partialorder %v221_v20, 0.0  ;;  %v255_v25 = vmul.f32 0.2, %v221_v20  ;;  %v270_v26 = vsel %vm238_vm14, %v218_v15, %v254_v19  ;;  %955 = vmatprep.subr.bf16.mxu0 %v1020_v23 }
  0xf7   :  { %vm237_vm1 = vcmp.gt.f32.partialorder %v213_v24, 0.0  ;;  %v253_v27 = vmul.f32 0.2, %v213_v24  ;;  %v268_v28 = vsel %vm236_vm15, %v210_v17, %v252_v22  ;;  %956 = vmatpush3.bf16.msra.mxu0 %v1020_v23 }
  0xf8   :  { %v271_v29 = vsel %vm239_vm0, %v221_v20, %v255_v25  ;;  %957 = vmatprep.subr.bf16.mxu0 %v1021_v34 }
  0xf9   :  { %v269_v30 = vsel %vm237_vm1, %v213_v24, %v253_v27  ;;  %v279_v31 = vpack.c.bf16 %v271_v29, %v270_v26 }
  0xfa   :  { %v278_v32 = vpack.c.bf16 %v269_v30, %v268_v28 }
  0xfb   :  { %958 = vmatpush3.bf16.msra.mxu0 %v1021_v34 }
  0xfc   :  { %939 = vmatprep.mubr.bf16.mxu1 %v278_v32 }
  0xfd   :  { %940 = vmatmul.mubr.bf16.gmra.mrb[12].mxu1 %v279_v31 }
 0x1b8   :  { %v929_v36 = vpop.f32.mrb[0].mxu1 }
 0x1b9   :  { %v394_v37 = vadd.f32 %v929_v36, %v1181_v35  ;;  %v385_v38 = vpop.f32.mrb[1].mxu1 }
 0x1ba   :  { %v386_v39 = vadd.f32 %v1181_v35, %v385_v38  ;;  %v930_v40 = vpop.f32.mrb[2].mxu1 }
 0x1bb   :  { %v466_v41 = vmul.f32 0.2, %v394_v37  ;;  %v397_v42 = vadd.f32 %v930_v40, %v1181_v35  ;;  %v388_v43 = vpop.f32.mrb[3].mxu1  ;;  %vm450_vm2 = vcmp.gt.f32.partialorder %v394_v37, 0.0 }
 0x1bc   :  { %v464_v44 = vmul.f32 0.2, %v386_v39  ;;  %v389_v45 = vadd.f32 %v1181_v35, %v388_v43  ;;  %vm448_vm3 = vcmp.gt.f32.partialorder %v386_v39, 0.0 }
 0x1bd   :  { %vm451_vm4 = vcmp.gt.f32.partialorder %v397_v42, 0.0  ;;  %v467_v46 = vmul.f32 0.2, %v397_v42  ;;  %v482_v48 = vsel %vm450_vm2, %v394_v37, %v466_v41 }
 0x1be   :  { %vm449_vm5 = vcmp.gt.f32.partialorder %v389_v45, 0.0  ;;  %v465_v47 = vmul.f32 0.2, %v389_v45  ;;  %v480_v52 = vsel %vm448_vm3, %v386_v39, %v464_v44 }
 0x1bf   :  { %v483_v49 = vsel %vm451_vm4, %v397_v42, %v467_v46 }
 0x1c0   :  { %v497_v50 = vpack.c.bf16 %v483_v49, %v482_v48  ;;  %v933_v51 = vpop.f32.mrb[4].mxu1  ;;  %v481_v53 = vsel %vm449_vm5, %v389_v45, %v465_v47  ;;  %v1202_v45 = vld [vmem:[%s1244_s6] ss:$0 sm:$0xff] }
 0x1c1   :  { %v410_v54 = vadd.f32 %v933_v51, %v1181_v35  ;;  %v401_v55 = vpop.f32.mrb[5].mxu1  ;;  %v496_v56 = vpack.c.bf16 %v481_v53, %v480_v52 }
 0x1c2   :  { %v402_v57 = vadd.f32 %v1181_v35, %v401_v55  ;;  %v934_v58 = vpop.f32.mrb[6].mxu1 }
 0x1c3   :  { %v470_v59 = vmul.f32 0.2, %v410_v54  ;;  %v413_v60 = vadd.f32 %v934_v58, %v1181_v35  ;;  %v404_v61 = vpop.f32.mrb[7].mxu1  ;;  %959 = vmatprep.mubr.bf16.mxu0 %v496_v56  ;;  %vm454_vm6 = vcmp.gt.f32.partialorder %v410_v54, 0.0 }
 0x1c4   :  { %v468_v62 = vmul.f32 0.2, %v402_v57  ;;  %v405_v63 = vadd.f32 %v1181_v35, %v404_v61  ;;  %960 = vmatmul.mubr.bf16.vlgmr.msra.gmra.mrb[16].mxu0 %v497_v50  ;;  %vm452_vm7 = vcmp.gt.f32.partialorder %v402_v57, 0.0 }
 0x1c5   :  { %vm455_vm8 = vcmp.gt.f32.partialorder %v413_v60, 0.0  ;;  %v471_v0 = vmul.f32 0.2, %v413_v60  ;;  %v486_v2 = vsel %vm454_vm6, %v410_v54, %v470_v59 }
 0x1c6   :  { %vm453_vm9 = vcmp.gt.f32.partialorder %v405_v63, 0.0  ;;  %v469_v1 = vmul.f32 0.2, %v405_v63  ;;  %v484_v5 = vsel %vm452_vm7, %v402_v57, %v468_v62  ;;  %v1022_v62 = vmov 0.0  }
 0x1c7   :  { %v487_v3 = vsel %vm455_vm8, %v413_v60, %v471_v0  ;;  %975 = vmatprep.subr.bf16.mxu1 %v1022_v62 }
 0x1c8   :  { %v937_v4 = vpop.f32.mrb[8].mxu1  ;;  %v485_v6 = vsel %vm453_vm9, %v405_v63, %v469_v1  ;;  %v499_v7 = vpack.c.bf16 %v487_v3, %v486_v2 }
 0x1c9   :  { %v426_v8 = vadd.f32 %v937_v4, %v1181_v35  ;;  %v417_v9 = vpop.f32.mrb[9].mxu1  ;;  %v498_v10 = vpack.c.bf16 %v485_v6, %v484_v5 }
 0x1ca   :  { %v418_v11 = vadd.f32 %v1181_v35, %v417_v9  ;;  %v938_v12 = vpop.f32.mrb[10].mxu1 }
 0x1cb   :  { %vm458_vm10 = vcmp.gt.f32.partialorder %v426_v8, 0.0  ;;  %v474_v13 = vmul.f32 0.2, %v426_v8  ;;  %v429_v14 = vadd.f32 %v938_v12, %v1181_v35  ;;  %v420_v15 = vpop.f32.mrb[11].mxu1  ;;  %963 = vmatprep.mubr.bf16.mxu0 %v498_v10 }
 0x1cc   :  { %vm456_vm11 = vcmp.gt.f32.partialorder %v418_v11, 0.0  ;;  %v472_v16 = vmul.f32 0.2, %v418_v11  ;;  %v421_v17 = vadd.f32 %v1181_v35, %v420_v15  ;;  %964 = vmatmul.mubr.bf16.gmra.mrb[20].mxu0 %v499_v7 }
 0x1cd   :  { %vm459_vm12 = vcmp.gt.f32.partialorder %v429_v14, 0.0  ;;  %v475_v18 = vmul.f32 0.2, %v429_v14  ;;  %v490_v19 = vsel %vm458_vm10, %v426_v8, %v474_v13 }
 0x1ce   :  { %vm457_vm13 = vcmp.gt.f32.partialorder %v421_v17, 0.0  ;;  %v473_v20 = vmul.f32 0.2, %v421_v17  ;;  %v488_v21 = vsel %vm456_vm11, %v418_v11, %v472_v16 }
 0x1cf   :  { %v491_v22 = vsel %vm459_vm12, %v429_v14, %v475_v18 }
 0x1d0   :  { %v489_v24 = vsel %vm457_vm13, %v421_v17, %v473_v20  ;;  %v501_v25 = vpack.c.bf16 %v491_v22, %v490_v19  ;;  %v941_v26 = vpop.f32.mrb[12].mxu1 }
 0x1d1   :  { %v500_v27 = vpack.c.bf16 %v489_v24, %v488_v21  ;;  %v442_v28 = vadd.f32 %v941_v26, %v1181_v35  ;;  %v433_v29 = vpop.f32.mrb[13].mxu1 }
 0x1d2   :  { %v434_v30 = vadd.f32 %v1181_v35, %v433_v29  ;;  %v942_v31 = vpop.f32.mrb[14].mxu1 }
 0x1d3   :  { %967 = vmatprep.mubr.bf16.mxu0 %v500_v27  ;;  %vm462_vm14 = vcmp.gt.f32.partialorder %v442_v28, 0.0  ;;  %v478_v32 = vmul.f32 0.2, %v442_v28  ;;  %v445_v33 = vadd.f32 %v942_v31, %v1181_v35  ;;  %v436_v23 = vpop.f32.mrb[15].mxu1 }
 0x1d4   :  { %968 = vmatmul.mubr.bf16.gmra.mrb[24].mxu0 %v501_v25  ;;  %vm460_vm15 = vcmp.gt.f32.partialorder %v434_v30, 0.0  ;;  %v476_v34 = vmul.f32 0.2, %v434_v30  ;;  %v437_v36 = vadd.f32 %v1181_v35, %v436_v23 }
 0x1d5   :  { %vm463_vm0 = vcmp.gt.f32.partialorder %v445_v33, 0.0  ;;  %v479_v37 = vmul.f32 0.2, %v445_v33  ;;  %v494_v38 = vsel %vm462_vm14, %v442_v28, %v478_v32 }
 0x1d6   :  { %vm461_vm1 = vcmp.gt.f32.partialorder %v437_v36, 0.0  ;;  %v477_v39 = vmul.f32 0.2, %v437_v36  ;;  %v492_v40 = vsel %vm460_vm15, %v434_v30, %v476_v34 }
 0x1d7   :  { %v495_v41 = vsel %vm463_vm0, %v445_v33, %v479_v37 }
 0x1d8   :  { %v493_v42 = vsel %vm461_vm1, %v437_v36, %v477_v39  ;;  %v503_v43 = vpack.c.bf16 %v495_v41, %v494_v38 }
 0x1d9   :  { %v502_v44 = vpack.c.bf16 %v493_v42, %v492_v40 }
 0x1db   :  { %971 = vmatprep.mubr.bf16.mxu0 %v502_v44 }
 0x1dc   :  { %972 = vmatmul.mubr.bf16.gmra.mrb[28].mxu0 %v503_v43 }
 0x297   :  { %v961_v46 = vpop.f32.mrb[16].mxu0 }
 0x298   :  { %v609_v47 = vpop.f32.mrb[17].mxu0  ;;  %v618_v52 = vadd.f32 %v961_v46, %v1202_v45 }
 0x299   :  { %v610_v35 = vadd.f32 %v1202_v45, %v609_v47  ;;  %v962_v48 = vpop.f32.mrb[18].mxu0 }
 0x29a   :  { %v612_v49 = vpop.f32.mrb[19].mxu0  ;;  %v621_v57 = vadd.f32 %v962_v48, %v1202_v45  ;;  %v690_v60 = vmul.f32 0.2, %v618_v52  ;;  %vm674_vm4 = vcmp.gt.f32.partialorder %v618_v52, 0.0 }
 0x29b   :  { %v613_v50 = vadd.f32 %v1202_v45, %v612_v49  ;;  %vm672_vm2 = vcmp.gt.f32.partialorder %v610_v35, 0.0  ;;  %v688_v51 = vmul.f32 0.2, %v610_v35 }
 0x29c   :  { %v706_v0 = vsel %vm674_vm4, %v618_v52, %v690_v60  ;;  %v691_v1 = vmul.f32 0.2, %v621_v57  ;;  %vm675_vm5 = vcmp.gt.f32.partialorder %v621_v57, 0.0 }
 0x29d   :  { %v704_v53 = vsel %vm672_vm2, %v610_v35, %v688_v51  ;;  %v689_v54 = vmul.f32 0.2, %v613_v50  ;;  %vm673_vm3 = vcmp.gt.f32.partialorder %v613_v50, 0.0  ;;  %vm1023_vm2 = vmmov 0  }
 0x29e   :  { %720 = vxpose.xlu0.b32.start [1/16] %v704_v53, 128  ;;  %v707_v6 = vsel %vm675_vm5, %v621_v57, %v691_v1  ;;  %991 = vmatprep.mubr.msk.bf16.mxu1 %vm1023_vm2, %v1022_v62 }
 0x29f   :  { %v965_v55 = vpop.f32.mrb[20].mxu0  ;;  %v705_v59 = vsel %vm673_vm3, %v613_v50, %v689_v54 }
 0x2a0   :  { %v625_v56 = vpop.f32.mrb[21].mxu0  ;;  %v634_v9 = vadd.f32 %v965_v55, %v1202_v45 }
 0x2a1   :  { %v966_v58 = vpop.f32.mrb[22].mxu0  ;;  %v626_v63 = vadd.f32 %v1202_v45, %v625_v56 }
 0x2a2   :  { %v628_v61 = vpop.f32.mrb[23].mxu0  ;;  %721 = vxpose.xlu0.b32.cont [2/16] %v705_v59, 128  ;;  %v637_v14 = vadd.f32 %v966_v58, %v1202_v45  ;;  %v694_v16 = vmul.f32 0.2, %v634_v9  ;;  %vm678_vm8 = vcmp.gt.f32.partialorder %v634_v9, 0.0 }
 0x2a3   :  { %v629_v4 = vadd.f32 %v1202_v45, %v628_v61  ;;  %v692_v7 = vmul.f32 0.2, %v626_v63  ;;  %vm676_vm6 = vcmp.gt.f32.partialorder %v626_v63, 0.0 }
 0x2a4   :  { %v710_v20 = vsel %vm678_vm8, %v634_v9, %v694_v16  ;;  %v695_v21 = vmul.f32 0.2, %v637_v14  ;;  %vm679_vm9 = vcmp.gt.f32.partialorder %v637_v14, 0.0 }
 0x2a5   :  { %v708_v10 = vsel %vm676_vm6, %v626_v63, %v692_v7  ;;  %v693_v11 = vmul.f32 0.2, %v629_v4  ;;  %vm677_vm7 = vcmp.gt.f32.partialorder %v629_v4, 0.0  ;;  %v760_v7 = vld [vmem:[%s1245_s7] sm:$0x1] }
 0x2a6   :  { %722 = vxpose.xlu0.b32.cont [3/16] %v706_v0, 128  ;;  %v711_v24 = vsel %vm679_vm9, %v637_v14, %v695_v21 }
 0x2a7   :  { %v969_v2 = vpop.f32.mrb[24].mxu0  ;;  %v709_v15 = vsel %vm677_vm7, %v629_v4, %v693_v11 }
 0x2a8   :  { %v641_v3 = vpop.f32.mrb[25].mxu0  ;;  %v650_v26 = vadd.f32 %v969_v2, %v1202_v45 }
 0x2a9   :  { %v970_v5 = vpop.f32.mrb[26].mxu0  ;;  %v642_v19 = vadd.f32 %v1202_v45, %v641_v3 }
 0x2aa   :  { %v644_v8 = vpop.f32.mrb[27].mxu0  ;;  %723 = vxpose.xlu0.b32.cont [4/16] %v707_v6, 128  ;;  %v653_v29 = vadd.f32 %v970_v5, %v1202_v45  ;;  %v698_v31 = vmul.f32 0.2, %v650_v26  ;;  %vm682_vm12 = vcmp.gt.f32.partialorder %v650_v26, 0.0 }
 0x2ab   :  { %v645_v22 = vadd.f32 %v1202_v45, %v644_v8  ;;  %v696_v25 = vmul.f32 0.2, %v642_v19  ;;  %vm680_vm10 = vcmp.gt.f32.partialorder %v642_v19, 0.0  ;;  %v762_v8 = vstv %s1246_s8 }
 0x2ac   :  { %v714_v33 = vsel %vm682_vm12, %v650_v26, %v698_v31  ;;  %v699_v23 = vmul.f32 0.2, %v653_v29  ;;  %vm683_vm13 = vcmp.gt.f32.partialorder %v653_v29, 0.0 }
 0x2ad   :  { %v712_v27 = vsel %vm680_vm10, %v642_v19, %v696_v25  ;;  %v697_v28 = vmul.f32 0.2, %v645_v22  ;;  %vm681_vm11 = vcmp.gt.f32.partialorder %v645_v22, 0.0 }
 0x2ae   :  { %724 = vxpose.xlu0.b32.cont [5/16] %v708_v10, 128  ;;  %v715_v36 = vsel %vm683_vm13, %v653_v29, %v699_v23 }
 0x2af   :  { %v973_v12 = vpop.f32.mrb[28].mxu0  ;;  %v713_v30 = vsel %vm681_vm11, %v645_v22, %v697_v28 }
 0x2b0   :  { %v657_v13 = vpop.f32.mrb[29].mxu0  ;;  %v666_v38 = vadd.f32 %v973_v12, %v1202_v45 }
 0x2b1   :  { %v974_v17 = vpop.f32.mrb[30].mxu0  ;;  %v658_v32 = vadd.f32 %v1202_v45, %v657_v13 }
 0x2b2   :  { %725 = vxpose.xlu0.b32.cont [6/16] %v709_v15, 128  ;;  %v660_v18 = vpop.f32.mrb[31].mxu0  ;;  %v669_v41 = vadd.f32 %v974_v17, %v1202_v45  ;;  %v702_v43 = vmul.f32 0.2, %v666_v38  ;;  %vm686_vm0 = vcmp.gt.f32.partialorder %v666_v38, 0.0 }
 0x2b3   :  { %v661_v34 = vadd.f32 %v1202_v45, %v660_v18  ;;  %v700_v37 = vmul.f32 0.2, %v658_v32  ;;  %vm684_vm14 = vcmp.gt.f32.partialorder %v658_v32, 0.0 }
 0x2b4   :  { %v718_v44 = vsel %vm686_vm0, %v666_v38, %v702_v43  ;;  %v703_v46 = vmul.f32 0.2, %v669_v41  ;;  %vm687_vm1 = vcmp.gt.f32.partialorder %v669_v41, 0.0 }
 0x2b5   :  { %v716_v39 = vsel %vm684_vm14, %v658_v32, %v700_v37  ;;  %v701_v40 = vmul.f32 0.2, %v661_v34  ;;  %vm685_vm15 = vcmp.gt.f32.partialorder %v661_v34, 0.0 }
 0x2b6   :  { %726 = vxpose.xlu0.b32.cont [7/16] %v710_v20, 128  ;;  %v719_v47 = vsel %vm687_vm1, %v669_v41, %v703_v46 }
 0x2b7   :  { %v717_v42 = vsel %vm685_vm15, %v661_v34, %v701_v40 }
 0x2ba   :  { %727 = vxpose.xlu0.b32.cont [8/16] %v711_v24, 128 }
 0x2be   :  { %728 = vxpose.xlu0.b32.cont [9/16] %v712_v27, 128 }
 0x2c2   :  { %729 = vxpose.xlu0.b32.cont [10/16] %v713_v30, 128 }
 0x2c6   :  { %730 = vxpose.xlu0.b32.cont [11/16] %v714_v33, 128 }
 0x2ca   :  { %731 = vxpose.xlu0.b32.cont [12/16] %v715_v36, 128 }
 0x2ce   :  { %732 = vxpose.xlu0.b32.cont [13/16] %v716_v39, 128 }
 0x2d2   :  { %733 = vxpose.xlu0.b32.cont [14/16] %v717_v42, 128 }
 0x2d6   :  { %734 = vxpose.xlu0.b32.cont [15/16] %v718_v44, 128 }
 0x2da   :  { %735 = vxpose.xlu0.b32.end [16/16] %v719_v47, 128 }
 0x31e   :  { %v736_v35 = vpop.trf.xlu0 }
 0x322   :  { %v737_v48 = vpop.trf.xlu0 }
 0x323   :  { %v752_v49 = vpack.c.bf16 %v737_v48, %v736_v35 }
 0x325   :  { %976 = vmatpush3.bf16.msra.mxu1 %v752_v49 }
 0x326   :  { %v738_v50 = vpop.trf.xlu0  ;;  %977 = vmatprep.subr.bf16.mxu1 %v1022_v62 }
 0x32a   :  { %v739_v45 = vpop.trf.xlu0 }
 0x32b   :  { %v753_v51 = vpack.c.bf16 %v739_v45, %v738_v50 }
 0x32d   :  { %978 = vmatpush3.bf16.msra.mxu1 %v753_v51 }
 0x32e   :  { %v740_v52 = vpop.trf.xlu0  ;;  %979 = vmatprep.subr.bf16.mxu1 %v1022_v62 }
 0x332   :  { %v741_v53 = vpop.trf.xlu0 }
 0x333   :  { %v754_v54 = vpack.c.bf16 %v741_v53, %v740_v52 }
 0x335   :  { %980 = vmatpush3.bf16.msra.mxu1 %v754_v54 }
 0x336   :  { %v742_v55 = vpop.trf.xlu0  ;;  %981 = vmatprep.subr.bf16.mxu1 %v1022_v62 }
 0x33a   :  { %v743_v56 = vpop.trf.xlu0 }
 0x33b   :  { %v755_v57 = vpack.c.bf16 %v743_v56, %v742_v55 }
 0x33d   :  { %982 = vmatpush3.bf16.msra.mxu1 %v755_v57 }
 0x33e   :  { %v744_v58 = vpop.trf.xlu0  ;;  %983 = vmatprep.subr.bf16.mxu1 %v1022_v62 }
 0x342   :  { %v745_v59 = vpop.trf.xlu0 }
 0x343   :  { %v756_v60 = vpack.c.bf16 %v745_v59, %v744_v58 }
 0x345   :  { %984 = vmatpush3.bf16.msra.mxu1 %v756_v60 }
 0x346   :  { %v746_v61 = vpop.trf.xlu0  ;;  %985 = vmatprep.subr.bf16.mxu1 %v1022_v62 }
 0x34a   :  { %v747_v63 = vpop.trf.xlu0 }
 0x34b   :  { %v757_v0 = vpack.c.bf16 %v747_v63, %v746_v61 }
 0x34d   :  { %986 = vmatpush3.bf16.msra.mxu1 %v757_v0 }
 0x34e   :  { %v748_v1 = vpop.trf.xlu0  ;;  %987 = vmatprep.subr.bf16.mxu1 %v1022_v62 }
 0x352   :  { %v749_v2 = vpop.trf.xlu0 }
 0x353   :  { %v758_v3 = vpack.c.bf16 %v749_v2, %v748_v1 }
 0x355   :  { %988 = vmatpush3.bf16.msra.mxu1 %v758_v3 }
 0x356   :  { %v750_v4 = vpop.trf.xlu0  ;;  %989 = vmatprep.subr.bf16.mxu1 %v1022_v62 }
 0x35a   :  { %v751_v5 = vpop.trf.xlu0 }
 0x35b   :  { %v759_v6 = vpack.c.bf16 %v751_v5, %v750_v4 }
 0x35d   :  { %990 = vmatpush3.bf16.msra.mxu1 %v759_v6 }
 0x360   :  { %992 = vmatmul.mubr.bf16.vlgmr.msra.gmra.mrb[16].mxu1 %v760_v7 }
 0x433   :  { %v797_v9 = vpop.f32.mrb[16].mxu1 }
 0x434   :  { %v798_v10 = vadd.f32 %v797_v9, %v762_v8  ;;  %v993_v11 = vpop.f32.mrb[17].mxu1 }
 0x435   :  { %v800_v12 = vpop.f32.mrb[18].mxu1 }
 0x436   :  { %803 = vst [vmem:[%s1247_s9] sm:$0x1] %v798_v10  ;;  %v994_v62 = vpop.f32.mrb[19].mxu1 }

</bundles_post_ra>
